<compile_context>
chip_gen: v5e
topology: v5e:2x2
jax: 0.10.0
libtpu: 0.0.40
codegen_flags: <defaults>
</compile_context>

<pallas_src>
import jax
import jax.numpy as jnp
from jax.experimental import pallas as pl
from jax.experimental.pallas import tpu as pltpu


def _rationale_kernel(out_ref, rat_ref, preds_ref, hards_ref):
    # Pure VPU elementwise streaming; results stored as int8 (0/1).
    preds_ref[...] = (out_ref[...] > 0.0).astype(jnp.int8)   # output > 0
    hards_ref[...] = (rat_ref[...] > 0.5).astype(jnp.int8)   # rationale > 0.5


def _round_up(x, m):
    return -(-x // m) * m


def _vmem_capacity_bytes():
    """Best-effort trace-time VMEM query; conservative (v7x per-TC) fallback."""
    try:
        cap = getattr(pltpu.get_tpu_info(), "vmem_capacity_bytes", None)
        if cap:
            return int(cap)
    except Exception:
        pass
    return 64 * 1024 * 1024


def rationale_task_forward(output, rationale, mask, label):
    """output:[B,S] f32, rationale:[B,S] f32, mask:[B,S] bool, label:[B,L] (L>=2).

    Returns a dict matching RationaleTask.forward. `preds`/`hards` are int8 0/1
    (consumers treat nonzero as True); `masks` is bool.
    """
    B, S = output.shape
    assert rationale.shape == (B, S) and mask.shape == (B, S)
    assert label.ndim == 2 and label.shape[0] == B and label.shape[1] >= 2, \
        "label must be [B, L] with L >= 2 (uses label[:, 1])"

    # masks = mask & (label[:, 1] > 0)[:, None]  -- one fused XLA elementwise
    # pass (bool -> bool), removed from the Pallas kernel per the perf review.
    masks = jnp.logical_and(mask, (label[:, 1] > 0)[:, None])

    # --- generation-aware tile caps & VMEM limit ---------------------------
    vmem_cap = _vmem_capacity_bytes()
    if vmem_cap >= 100 * 1024 * 1024:            # v5e / v6e: 128 MiB physical
        batch_cap, seq_cap = 512, 4096           # ~20 MiB/step, ~40 MiB dbuf
        vmem_limit = 96 * 1024 * 1024
    else:                                        # v7x: 64 MiB per TensorCore
        batch_cap, seq_cap = 512, 2048           # ~10 MiB/step, ~20 MiB dbuf
        vmem_limit = 48 * 1024 * 1024

    # Full dim if small (always legal), otherwise caps that are multiples of
    # the TPU tiling (512 % 32 == 0 for int8 sublanes, 2048/4096 % 128 == 0).
    tb = B if B <= batch_cap else batch_cap
    ts = S if S <= seq_cap else seq_cap

    # v7x has 2 TensorCores: make sure >= 2 blocks exist along a "parallel"
    # axis when the problem is big enough to be worth splitting.
    if pl.cdiv(B, tb) == 1 and pl.cdiv(S, ts) == 1:
        if S >= 256:
            ts = _round_up(pl.cdiv(S, 2), 128)
        elif B >= 64:
            tb = _round_up(pl.cdiv(B, 2), 32)
        # else: tiny problem, a single block is fine.

    grid = (pl.cdiv(B, tb), pl.cdiv(S, ts))
    tok_spec = pl.BlockSpec((tb, ts), lambda i, j: (i, j))

    cost = pl.CostEstimate(
        flops=2 * B * S,                          # two elementwise compares
        transcendentals=0,
        bytes_accessed=B * S * (4 + 4 + 1 + 1),   # 10 B/elem streamed
    )

    preds_i8, hards_i8 = pl.pallas_call(
        _rationale_kernel,
        out_shape=(
            jax.ShapeDtypeStruct((B, S), jnp.int8),
            jax.ShapeDtypeStruct((B, S), jnp.int8),
        ),
        grid=grid,
        in_specs=[tok_spec, tok_spec],
        out_specs=(tok_spec, tok_spec),
        compiler_params=pltpu.CompilerParams(
            dimension_semantics=("parallel", "parallel"),
            vmem_limit_bytes=vmem_limit,
        ),
        cost_estimate=cost,
    )(output, rationale)

    return {
        "logits": output,
        "trues": rationale,
        "preds": preds_i8,   # int8 0/1 (nonzero == True), no extra astype pass
        "hards": hards_i8,   # int8 0/1
        "masks": masks,      # bool, fused wrapper pass
    }


if __name__ == "__main__":
    key = jax.random.PRNGKey(0)
    k1, k2, k3, k4 = jax.random.split(key, 4)

    B, S, L = 8, 128, 2   # small demo shapes: batch=8, seq=128, 2 label columns

    output = jax.random.normal(k1, (B, S), dtype=jnp.float32)        # rationale logits
    rationale = jax.random.uniform(k2, (B, S), dtype=jnp.float32)    # soft rationale targets
    mask = jax.random.bernoulli(k3, 0.8, (B, S))                     # token mask (bool)
    # label[:, 1] > 0 gates whether a sample contributes to the rationale task
    label = jax.random.bernoulli(k4, 0.5, (B, L)).astype(jnp.float32)

    results = rationale_task_forward(output, rationale, mask, label)
    jax.tree_util.tree_map(jax.block_until_ready, results)

    # Reference (pure JAX) check of semantics.
    ref_preds = output > 0
    ref_hards = rationale > 0.5
    ref_masks = mask & (label[:, 1] > 0)[:, None]

    assert bool(jnp.array_equal(results["logits"], output))
    assert bool(jnp.array_equal(results["trues"], rationale))
    assert results["preds"].dtype == jnp.int8
    assert results["hards"].dtype == jnp.int8
    assert results["masks"].dtype == jnp.bool_
    assert bool(jnp.array_equal(results["preds"], ref_preds.astype(jnp.int8)))
    assert bool(jnp.array_equal(results["hards"], ref_hards.astype(jnp.int8)))
    assert bool(jnp.array_equal(results["masks"], ref_masks))

    print("KERNEL_OK")
</pallas_src>

<mosaic_0001>
module attributes {stable_mosaic.version = 11 : i64} {
  func.func @_rationale_kernel(%arg0: i32, %arg1: i32, %arg2: memref<8x128xf32, #tpu.memory_space<vmem>>, %arg3: memref<8x128xf32, #tpu.memory_space<vmem>>, %arg4: memref<8x128xi8, #tpu.memory_space<vmem>>, %arg5: memref<8x128xi8, #tpu.memory_space<vmem>>) attributes {dimension_semantics = [#tpu.dimension_semantics<parallel>, #tpu.dimension_semantics<parallel>], iteration_bounds = array<i64: 1, 1>, scalar_prefetch = 0 : i64, scratch_operands = 0 : i64, tpu.core_type = #tpu.core_type<tc>, window_params = [{transform_indices = @transform_0, window_bounds = array<i64: 8, 128>}, {transform_indices = @transform_1, window_bounds = array<i64: 8, 128>}, {transform_indices = @transform_2, window_bounds = array<i64: 8, 128>}, {transform_indices = @transform_3, window_bounds = array<i64: 8, 128>}]} {
    %c0 = arith.constant 0 : index
    %c0_0 = arith.constant 0 : index
    %0 = vector.load %arg2[%c0, %c0_0] : memref<8x128xf32, #tpu.memory_space<vmem>>, vector<8x128xf32>
    %cst = arith.constant 0.000000e+00 : f32
    %1 = vector.broadcast %cst : f32 to vector<8x128xf32>
    %2 = arith.cmpf ogt, %0, %1 : vector<8x128xf32>
    %3 = arith.extui %2 : vector<8x128xi1> to vector<8x128xi8>
    %c0_1 = arith.constant 0 : index
    %c0_2 = arith.constant 0 : index
    %4 = vector.load %arg4[%c0_1, %c0_2] : memref<8x128xi8, #tpu.memory_space<vmem>>, vector<8x128xi8>
    tpu.vector_store %arg4[%c0_1, %c0_2], %3 {strides = array<i32>} : memref<8x128xi8, #tpu.memory_space<vmem>>, vector<8x128xi8>,
    %c0_3 = arith.constant 0 : index
    %c0_4 = arith.constant 0 : index
    %5 = vector.load %arg3[%c0_3, %c0_4] : memref<8x128xf32, #tpu.memory_space<vmem>>, vector<8x128xf32>
    %cst_5 = arith.constant 5.000000e-01 : f32
    %6 = vector.broadcast %cst_5 : f32 to vector<8x128xf32>
    %7 = arith.cmpf ogt, %5, %6 : vector<8x128xf32>
    %8 = arith.extui %7 : vector<8x128xi1> to vector<8x128xi8>
    %c0_6 = arith.constant 0 : index
    %c0_7 = arith.constant 0 : index
    %9 = vector.load %arg5[%c0_6, %c0_7] : memref<8x128xi8, #tpu.memory_space<vmem>>, vector<8x128xi8>
    tpu.vector_store %arg5[%c0_6, %c0_7], %8 {strides = array<i32>} : memref<8x128xi8, #tpu.memory_space<vmem>>, vector<8x128xi8>,
    return
  }
  func.func @transform_0(%arg0: i32, %arg1: i32) -> (i32, i32) {
    %c0_i32 = arith.constant 0 : i32
    return %arg0, %arg1 : i32, i32
  }
  func.func @transform_1(%arg0: i32, %arg1: i32) -> (i32, i32) {
    %c0_i32 = arith.constant 0 : i32
    return %arg0, %arg1 : i32, i32
  }
  func.func @transform_2(%arg0: i32, %arg1: i32) -> (i32, i32) {
    %c0_i32 = arith.constant 0 : i32
    return %arg0, %arg1 : i32, i32
  }
  func.func @transform_3(%arg0: i32, %arg1: i32) -> (i32, i32) {
    %c0_i32 = arith.constant 0 : i32
    return %arg0, %arg1 : i32, i32
  }
}

</mosaic_0001>

<bundles_post_ra>
// kernel: tpu_custom_call.1
= control target key start
LH: loop header
LB: loop body
LE: loop exit
PB: predicated region body
PF: predicated region fallthrough
CT: control target
= control target key end

     0   :  { %9 = vsyncpa [#allocation3], 0  ;;  %s243_s0 = inlined_call_operand.hbm [shape: f32[8,128], index: 0, kind: input, shape index: {}]   ;;  %s244_s1 = inlined_call_operand.hbm [shape: f32[8,128], index: 1, kind: input, shape index: {}]   ;;  %s245_s2 = inlined_call_operand.hbm [shape: s8[8,128], index: 2, kind: output, shape index: {0}]   ;;  %s246_s3 = inlined_call_operand.hbm [shape: s8[8,128], index: 3, kind: output, shape index: {1}]  }
   0x1   :  { %10 = vsyncpa [#allocation6], 0 }
   0x2   :  { %11 = vsyncpa [#allocation4], 0 }
   0x3   :  { %12 = vsyncpa [#allocation9], 0  ;;  %s18_s14 = sshll.u32 %s243_s0, 4  ;;  %s206_s15 = smov [#allocation2]   ;;  %s19_s14 = int_to_ptr.hbm [resolvable:$true] %s18_s14 }
   0x4   :  { %s20_s16 = sshll.u32 %s206_s15, 4  ;;  %s29_s19 = sshll.u32 %s244_s1, 4  ;;  %s21_s16 = int_to_ptr.vmem [resolvable:$true] %s20_s16  ;;  %s30_s19 = int_to_ptr.hbm [resolvable:$true] %s29_s19 }
   0x5   :  { %23 = dma.hbm_to_vmem [thread:$0]  %s19_s14, 128, %s21_s16, [#allocation3]  }
   0x6   :  { %s207_s20 = smov [#allocation5]  }
   0x7   :  { %s31_s21 = sshll.u32 %s207_s20, 4  ;;  %s32_s21 = int_to_ptr.vmem [resolvable:$true] %s31_s21 }
   0x8   :  { %34 = dma.hbm_to_vmem [thread:$0]  %s30_s19, 128, %s32_s21, [#allocation6]  }
   0x9   :  { %198 = dma.done.wait [#allocation3], 128  }
   0xa   :  { %199 = vsyncadd [#allocation3], 4294967168 }
   0xb   :  { %200 = dma.done.wait [#allocation6], 128  }
   0xc   :  { %201 = vsyncadd [#allocation6], 4294967168  ;;  %v45_v0 = vld [vmem:[#allocation2] sm:$0xff]  ;;  %v54_v1 = vld [vmem:[#allocation5] sm:$0xff]  ;;  %v208_v2 = vmov 0   ;;  %s209_s0 = smov [#allocation7]  }
   0xd   :  { %vm46_vm0 = vcmp.gt.f32.partialorder %v45_v0, 0.0  ;;  %vm55_vm1 = vcmp.gt.f32.partialorder %v54_v1, 0.5  ;;  %s68_s1 = sshll.u32 %s209_s0, 4  ;;  %s70_s24 = sshll.u32 %s245_s2, 4  ;;  %s69_s1 = int_to_ptr.vmem [resolvable:$true] %s68_s1  ;;  %s71_s24 = int_to_ptr.hbm [resolvable:$true] %s70_s24 }
   0xe   :  { %vm47_vm2 = vmpackc.low %vm46_vm0, %vm46_vm0  ;;  %s210_s25 = smov [#allocation8]   ;;  %s81_s29 = sshll.u32 %s246_s3, 4  ;;  %s82_s29 = int_to_ptr.hbm [resolvable:$true] %s81_s29 }
   0xf   :  { %v48_v3 = vsel %vm47_vm2, 16711935, %v208_v2  ;;  %vm56_vm3 = vmpackc.low %vm55_vm1, %vm55_vm1  ;;  %s79_s26 = sshll.u32 %s210_s25, 4  ;;  %s80_s26 = int_to_ptr.vmem [resolvable:$true] %s79_s26 }
  0x10   :  { %v50_v4 = vpack.c.b8 %v48_v3, %v48_v3  ;;  %v57_v5 = vsel %vm56_vm3, 16711935, %v208_v2 }
  0x11   :  { %v59_v6 = vpack.c.b8 %v57_v5, %v57_v5 }
  0x12   :  { %vm51_vm4 = vnez %v50_v4 }
  0x13   :  { %v52_v7 = vsel %vm51_vm4, 16843009, %v208_v2  ;;  %vm60_vm5 = vnez %v59_v6 }
  0x14   :  { %53 = vst [vmem:[#allocation7] sm:$0x3] %v52_v7  ;;  %v61_v8 = vsel %vm60_vm5, 16843009, %v208_v2 }
  0x15   :  { %62 = vst [vmem:[#allocation8] sm:$0x3] %v61_v8  ;;  %73 = dma.vmem_to_hbm [thread:$0]  %s69_s1, 32, %s71_s24, [#allocation4]  }
  0x16   :  { %84 = dma.vmem_to_hbm [thread:$0]  %s80_s26, 32, %s82_s29, [#allocation9]  }
  0x17   :  { %202 = dma.done.wait [#allocation4], 32  }
  0x18   :  { %203 = vsyncadd [#allocation4], 4294967264 }
  0x19   :  { %204 = dma.done.wait [#allocation9], 32  }
  0x1a   :  { %205 = vsyncadd [#allocation9], 4294967264 }
  0x1b   :  { %93 = vsyncpa [#allocation3], 1 }
  0x1c   :  { %94 = vsyncpa [#allocation6], 1 }
  0x1d   :  { %95 = vsyncpa [#allocation4], 1 }
  0x1e   :  { %96 = vsyncpa [#allocation9], 1 }

</bundles_post_ra>
